<compile_context>
chip_gen: v5e
topology: v5e:2x2
jax: 0.10.0
libtpu: 0.0.40
codegen_flags: <defaults>
</compile_context>

<pallas_src>
import jax
import jax.numpy as jnp
from jax.experimental import pallas as pl
from jax.experimental.pallas import tpu as pltpu


def _sine_gordon_hvf_kernel(dx, coef_q):
    """Kernel body closed over static grid spacing dx and coef_q = -(c^2)/dx."""

    def kernel(x_ref, out_ref):
        two_n = x_ref.shape[-1]
        n = two_n // 2
        # Upcast to f32 for compute (mandatory on v5e — no bf16 VPU/EUP; harmless
        # when the input is already f32).
        q = x_ref[:, :n].astype(jnp.float32)        # (TILE_B, N)
        p = x_ref[:, n:].astype(jnp.float32)        # (TILE_B, N)

        # 1D Dirichlet Laplacian stencil along the lane axis (XLU rolls; shifts
        # are non-negative, so the "+1" shift is expressed as n-1 mod n).
        q_left = pltpu.roll(q, 1, axis=1)           # index i sees q[i-1] (wraps at i=0)
        q_right = pltpu.roll(q, n - 1, axis=1)      # index i sees q[i+1] (wraps at i=n-1)

        # (1, N) edge masks; broadcasting handles the sublane/batch dimension.
        col = jax.lax.broadcasted_iota(jnp.int32, (1, n), 1)
        q_left = jnp.where(col == 0, 0.0, q_left)
        q_right = jnp.where(col == n - 1, 0.0, q_right)
        lap = 2.0 * q - q_left - q_right

        # forward = cat([H_op_p, -H_op_q - dx*sin(q)], -1)
        # TODO(synk): on v7x, if a bundle dump shows sin lowering to a VALU polynomial
        # that binds a single TC, swap in a range-reduced minimax approximation.
        out_ref[:, :n] = (dx * p).astype(out_ref.dtype)
        out_ref[:, n:] = (coef_q * lap - dx * jnp.sin(q)).astype(out_ref.dtype)

    return kernel


def _vmem_budget():
    """(per-buffer target bytes, scoped VMEM limit) picked per TPU generation."""
    try:
        vmem_cap = pltpu.get_tpu_info().vmem_capacity_bytes
    except Exception:
        vmem_cap = 64 << 20                         # conservative: assume v7x-sized VMEM
    if vmem_cap >= (96 << 20):                      # v5e / v6e: 128 MiB physical VMEM
        return 12 << 20, 96 << 20
    return 6 << 20, 48 << 20                        # v7x: 64 MiB/TC — leave headroom


def _pick_tile_b(b, two_n, itemsize, target_bytes, sublane, target_steps=8):
    """Batch tile: multiple of `sublane`, bounded by VMEM target, and shaped so the
    grid keeps >= ~target_steps steps when B is large (pipeline overlap + 2-TC use).
    """
    row_bytes = two_n * itemsize
    vmem_rows = max(sublane, (target_bytes // row_bytes) // sublane * sublane)
    if b >= target_steps * sublane:
        # Cap the tile so the grid has ~target_steps (ideally an even number of) steps.
        piped_rows = max(sublane, (b // target_steps) // sublane * sublane)
        rows = min(vmem_rows, piped_rows)
    else:
        rows = vmem_rows
    if b <= rows:
        return int(b)                               # full-extent block is always legal
    return int(rows)


def sine_gordon_hvf(tensor_in, mu_c, dx, tile_b=None, donate_input=False):
    """Pallas wrapper.

    tensor_in: (B, 2N) f32 or bf16 array = [q | p].
    mu_c, dx:  static Python scalars (wave speed c and grid spacing).
    donate_input: alias the output onto tensor_in's HBM buffer (caller must not
                  reuse tensor_in afterwards).
    """
    b, two_n = tensor_in.shape
    n = two_n // 2
    assert 2 * n == two_n, "last axis must hold [q | p] of equal length"
    # Lane-aligned halves keep every half-row load/store an unmasked full-lane op.
    assert n % 128 == 0, "spatial dim N must be a multiple of 128 (lane alignment)"
    assert tensor_in.dtype in (jnp.float32, jnp.bfloat16), "f32 or bf16 I/O only"

    itemsize = jnp.dtype(tensor_in.dtype).itemsize
    sublane = 8 if tensor_in.dtype == jnp.float32 else 16   # packed bf16 -> 16 sublanes
    target_bytes, vmem_limit = _vmem_budget()

    if tile_b is None:
        tile_b = _pick_tile_b(b, two_n, itemsize, target_bytes, sublane)
    grid = (pl.cdiv(b, tile_b),)

    # Fold scalars into the kernel closure: coef_q = -(c^2)/dx (sign folded in).
    coef_q = -(float(mu_c) ** 2) / float(dx)

    extra = {}
    if donate_input:
        extra["input_output_aliases"] = {0: 0}      # stencil is intra-block -> safe

    # TODO(synk): if a v7x profile shows only one TC active, switch the batch axis to
    # pltpu.CORE_PARALLEL (or an explicit core split); plain "parallel" kept here for
    # portability across v5e/v6e/v7x.
    return pl.pallas_call(
        _sine_gordon_hvf_kernel(float(dx), coef_q),
        out_shape=jax.ShapeDtypeStruct((b, two_n), tensor_in.dtype),
        grid=grid,
        in_specs=[pl.BlockSpec((tile_b, two_n), lambda i: (i, 0))],   # [q | p] batch tile
        out_specs=pl.BlockSpec((tile_b, two_n), lambda i: (i, 0)),
        compiler_params=pltpu.CompilerParams(
            dimension_semantics=("parallel",),      # shard batch tiles across TCs (v7x)
            vmem_limit_bytes=vmem_limit,            # generation-aware scoped limit
        ),
        cost_estimate=pl.CostEstimate(
            flops=8 * b * n,                        # stencil + scale/add per element
            transcendentals=b * n,                  # one sin per q element
            bytes_accessed=2 * b * two_n * itemsize,
        ),
        **extra,
    )(tensor_in)


def sine_gordon_hvf_ref(tensor_in, mu_c, dx):
    """Pure-JAX reference mirroring the torch module (computed in f32)."""
    x = tensor_in.astype(jnp.float32)
    n = x.shape[-1] // 2
    q, p = x[:, :n], x[:, n:]
    q_left = jnp.pad(q, ((0, 0), (1, 0)))[:, :-1]
    q_right = jnp.pad(q, ((0, 0), (0, 1)))[:, 1:]
    lap = 2.0 * q - q_left - q_right
    h_op_q = (mu_c * mu_c / dx) * lap
    h_op_p = dx * p
    non_quad = dx * jnp.sin(q)
    return jnp.concatenate([h_op_p, -h_op_q - non_quad], axis=-1)


if __name__ == "__main__":
    # Small, TPU-friendly shapes: batch=8, N=256 spatial dofs -> tensor_in (8, 512).
    # TODO(synk): for realistic speedups call with large B (>= ~64 so the grid gets
    # multiple pipelined steps) and, if tolerable, bf16 I/O.
    B, N = 8, 256
    DX = 50.0 / (N - 1)   # synthetic grid spacing of hamiltonian_in_torch
    MU_C = 1.0            # synthetic wave-speed parameter mu

    key = jax.random.PRNGKey(0)
    kq, kp = jax.random.split(key)
    q0 = jax.random.normal(kq, (B, N), jnp.float32)
    p0 = jax.random.normal(kp, (B, N), jnp.float32)
    tensor_in = jnp.concatenate([q0, p0], axis=-1)   # (B, 2N) = [q | p]

    # f32 path
    out = jax.block_until_ready(sine_gordon_hvf(tensor_in, MU_C, DX))
    ref = sine_gordon_hvf_ref(tensor_in, MU_C, DX)
    assert out.shape == (B, 2 * N) and out.dtype == jnp.float32
    assert jnp.allclose(out, ref, atol=1e-5, rtol=1e-5)

    # bf16 I/O path (compute still f32 in-kernel; 16-sublane tiles).
    B16 = 16
    q1 = jax.random.normal(kq, (B16, N), jnp.float32)
    p1 = jax.random.normal(kp, (B16, N), jnp.float32)
    x_bf16 = jnp.concatenate([q1, p1], axis=-1).astype(jnp.bfloat16)
    out_bf16 = jax.block_until_ready(sine_gordon_hvf(x_bf16, MU_C, DX))
    ref_bf16 = sine_gordon_hvf_ref(x_bf16, MU_C, DX)   # f32 ref on the bf16-cast inputs
    assert out_bf16.shape == (B16, 2 * N) and out_bf16.dtype == jnp.bfloat16
    assert jnp.allclose(out_bf16.astype(jnp.float32), ref_bf16, atol=5e-2, rtol=5e-2)

    print("KERNEL_OK")
</pallas_src>

<mosaic_0001>
module attributes {stable_mosaic.version = 11 : i64} {
  func.func @kernel(%arg0: i32, %arg1: memref<8x512xf32, #tpu.memory_space<vmem>>, %arg2: memref<8x512xf32, #tpu.memory_space<vmem>>) attributes {dimension_semantics = [#tpu.dimension_semantics<parallel>], iteration_bounds = array<i64: 1>, scalar_prefetch = 0 : i64, scratch_operands = 0 : i64, tpu.core_type = #tpu.core_type<tc>, window_params = [{transform_indices = @transform_0, window_bounds = array<i64: 8, 512>}, {transform_indices = @transform_1, window_bounds = array<i64: 8, 512>}]} {
    %c0 = arith.constant 0 : index
    %c0_0 = arith.constant 0 : index
    %0 = vector.load %arg1[%c0, %c0_0] : memref<8x512xf32, #tpu.memory_space<vmem>>, vector<8x256xf32>
    %c0_1 = arith.constant 0 : index
    %c256 = arith.constant 256 : index
    %1 = vector.load %arg1[%c0_1, %c256] : memref<8x512xf32, #tpu.memory_space<vmem>>, vector<8x256xf32>
    %c1_i32 = arith.constant 1 : i32
    %2 = tpu.dynamic_rotate %0 by %c1_i32 dim 1 : vector<8x256xf32>, i32 -> vector<8x256xf32>
    %c255_i32 = arith.constant 255 : i32
    %3 = tpu.dynamic_rotate %0 by %c255_i32 dim 1 : vector<8x256xf32>, i32 -> vector<8x256xf32>
    %4 = tpu.iota {dimensions = array<i32: 1>} : vector<1x256xi32>
    %c0_i32 = arith.constant 0 : i32
    %5 = vector.broadcast %c0_i32 : i32 to vector<1x256xi32>
    %6 = arith.cmpi eq, %4, %5 : vector<1x256xi32>
    %cst = arith.constant 0.000000e+00 : f32
    %7 = vector.shape_cast %6 : vector<1x256xi1> to vector<1x256xi1>
    %8 = vector.broadcast %7 : vector<1x256xi1> to vector<8x256xi1>
    %9 = vector.broadcast %cst : f32 to vector<8x256xf32>
    %10 = arith.select %8, %9, %2 : vector<8x256xi1>, vector<8x256xf32>
    %c255_i32_2 = arith.constant 255 : i32
    %11 = vector.broadcast %c255_i32_2 : i32 to vector<1x256xi32>
    %12 = arith.cmpi eq, %4, %11 : vector<1x256xi32>
    %cst_3 = arith.constant 0.000000e+00 : f32
    %13 = vector.shape_cast %12 : vector<1x256xi1> to vector<1x256xi1>
    %14 = vector.broadcast %13 : vector<1x256xi1> to vector<8x256xi1>
    %15 = vector.broadcast %cst_3 : f32 to vector<8x256xf32>
    %16 = arith.select %14, %15, %3 : vector<8x256xi1>, vector<8x256xf32>
    %cst_4 = arith.constant 2.000000e+00 : f32
    %17 = vector.broadcast %cst_4 : f32 to vector<8x256xf32>
    %18 = arith.mulf %17, %0 : vector<8x256xf32>
    %19 = arith.subf %18, %10 : vector<8x256xf32>
    %20 = arith.subf %19, %16 : vector<8x256xf32>
    %cst_5 = arith.constant 0.196078435 : f32
    %21 = vector.broadcast %cst_5 : f32 to vector<8x256xf32>
    %22 = arith.mulf %21, %1 : vector<8x256xf32>
    %c0_6 = arith.constant 0 : index
    %c0_7 = arith.constant 0 : index
    %23 = vector.load %arg2[%c0_6, %c0_7] : memref<8x512xf32, #tpu.memory_space<vmem>>, vector<8x256xf32>
    tpu.vector_store %arg2[%c0_6, %c0_7], %22 {strides = array<i32>} : memref<8x512xf32, #tpu.memory_space<vmem>>, vector<8x256xf32>,
    %cst_8 = arith.constant -5.100000e+00 : f32
    %24 = vector.broadcast %cst_8 : f32 to vector<8x256xf32>
    %25 = arith.mulf %24, %20 : vector<8x256xf32>
    %26 = math.sin %0 : vector<8x256xf32>
    %cst_9 = arith.constant 0.196078435 : f32
    %27 = vector.broadcast %cst_9 : f32 to vector<8x256xf32>
    %28 = arith.mulf %27, %26 : vector<8x256xf32>
    %29 = arith.subf %25, %28 : vector<8x256xf32>
    %c0_10 = arith.constant 0 : index
    %c256_11 = arith.constant 256 : index
    %30 = vector.load %arg2[%c0_10, %c256_11] : memref<8x512xf32, #tpu.memory_space<vmem>>, vector<8x256xf32>
    tpu.vector_store %arg2[%c0_10, %c256_11], %29 {strides = array<i32>} : memref<8x512xf32, #tpu.memory_space<vmem>>, vector<8x256xf32>,
    return
  }
  func.func @transform_0(%arg0: i32) -> (i32, i32) {
    %c0_i32 = arith.constant 0 : i32
    %c0_i32_0 = arith.constant 0 : i32
    return %arg0, %c0_i32 : i32, i32
  }
  func.func @transform_1(%arg0: i32) -> (i32, i32) {
    %c0_i32 = arith.constant 0 : i32
    %c0_i32_0 = arith.constant 0 : i32
    return %arg0, %c0_i32 : i32, i32
  }
}

</mosaic_0001>

<bundles_post_ra>
// kernel: tpu_custom_call.1
= control target key start
LH: loop header
LB: loop body
LE: loop exit
PB: predicated region body
PF: predicated region fallthrough
CT: control target
= control target key end

     0   :  { %6 = vsyncpa [#allocation3], 0  ;;  %s705_s0 = inlined_call_operand.hbm [shape: f32[8,512], index: 0, kind: input, shape index: {}]   ;;  %s706_s1 = inlined_call_operand.hbm [shape: f32[8,512], index: 1, kind: output, shape index: {}]  }
   0x1   :  { %7 = vsyncpa [#allocation4], 0  ;;  %s13_s8 = sshll.u32 %s705_s0, 4  ;;  %s474_s9 = smov [#allocation2]   ;;  %s14_s8 = int_to_ptr.hbm [resolvable:$true] %s13_s8 }
   0x2   :  { %s15_s10 = sshll.u32 %s474_s9, 4  ;;  %s16_s10 = int_to_ptr.vmem [resolvable:$true] %s15_s10 }
   0x3   :  { %18 = dma.hbm_to_vmem [thread:$0]  %s14_s8, 512, %s16_s10, [#allocation3]  }
   0x4   :  { %470 = dma.done.wait [#allocation3], 512  }
   0x5   :  { %471 = vsyncadd [#allocation3], 4294966784  ;;  %v498_v0 = vld [vmem:[#allocation2] sm:$0xff]  ;;  %v500_v1 = vld [vmem:[#allocation2 + $0x8] sm:$0xff]  ;;  %s475_s11 = smov 127   ;;  %s476_s12 = smov 1  }
   0x6   :  { %36 = vrot.lane.b32.xlu1 %v498_v0, %s475_s11  ;;  %v75_v2 = vand.u32 2139095040, %v498_v0  ;;  %27 = vrot.lane.b32.xlu0 %v498_v0, %s476_s12  ;;  %v230_v3 = vand.u32 2139095040, %v500_v1  ;;  %v227_v17 = vand.u32 2147483647, %v500_v1  ;;  %v477_v18 = vmov 2102212464  }
   0x7   :  { %v478_v21 = vmov 683565275   ;;  %v479_v23 = vmov 2475754826   ;;  %v480_v26 = vmov 2131351028  }
   0x8   :  { %v76_v4 = vshrl.u32 %v75_v2, 23  ;;  %v231_v5 = vshrl.u32 %v230_v3, 23  ;;  %v234_v20 = vand.u32 8388607, %v227_v17  ;;  %v481_v32 = vmov 920167782  }
   0x9   :  { %v482_v37 = vmov 1326507024   ;;  %v72_v45 = vand.u32 2147483647, %v498_v0  ;;  %s484_s0 = smov [#allocation5]   ;;  %s395_s16 = sshll.u32 %s706_s1, 4  ;;  %s396_s16 = int_to_ptr.hbm [resolvable:$true] %s395_s16 }
   0xa   :  { %v405_v6 = vadd.s32 4294967169, %v76_v4  ;;  %v408_v7 = vadd.s32 4294967169, %v231_v5  ;;  %v235_v30 = vor.u32 8388608, %v234_v20  ;;  %s393_s13 = sshll.u32 %s484_s0, 4  ;;  %s394_s13 = int_to_ptr.vmem [resolvable:$true] %s393_s13 }
   0xb   :  { %v570_v54 = vand.u32 8388607, %v72_v45 }
   0xc   :  { %v82_v8 = vadd.s32 1, %v405_v6  ;;  %v237_v9 = vadd.s32 1, %v408_v7  ;;  %v549_v43 = vshll.u32 %v235_v30, 8 }
   0xd   :  { %v80_v4 = vor.u32 8388608, %v570_v54 }
   0xe   :  { %vm83_vm0 = vcmp.gt.s32.totalorder %v82_v8, 0  ;;  %vm238_vm1 = vcmp.gt.s32.totalorder %v237_v9, 0  ;;  %38 = vrot.lane.b32.xlu1 %v500_v1, %s475_s11  ;;  %29 = vrot.lane.b32.xlu0 %v500_v1, %s476_s12  ;;  %v276_v50 = vand.u32 65535, %v549_v43  ;;  %v277_v53 = vshrl.u32 %v549_v43, 16 }
   0xf   :  { %v84_v10 = vsel %vm83_vm0, %v82_v8, 0  ;;  %v239_v11 = vsel %vm238_vm1, %v237_v9, 0 }
  0x10   :  { %v508_v12 = vand.u32 31, %v84_v10  ;;  %v241_v13 = vand.u32 31, %v239_v11  ;;  %v513_v15 = vshrl.u32 %v239_v11, 5  ;;  %v572_v55 = vshrl.u32 %v84_v10, 5 }
  0x12   :  { %v511_v14 = vsub.s32 32, %v508_v12  ;;  %v515_v16 = vsub.s32 32, %v241_v13  ;;  %v253_v19 = vshll.u32 %v477_v18, %v241_v13  ;;  %v244_v22 = vshll.u32 %v478_v21, %v241_v13 }
  0x13   :  { %v247_v25 = vshll.u32 %v479_v23, %v241_v13  ;;  %v250_v28 = vshll.u32 %v480_v26, %v241_v13  ;;  %v256_v34 = vshll.u32 %v481_v32, %v241_v13  ;;  %vm259_vm2 = vcmp.lt.s32.totalorder %v513_v15, 1 }
  0x14   :  { %v245_v24 = vshrl.u32 %v479_v23, %v515_v16  ;;  %v248_v27 = vshrl.u32 %v480_v26, %v515_v16  ;;  %v251_v29 = vshrl.u32 %v477_v18, %v515_v16  ;;  %v254_v33 = vshrl.u32 %v481_v32, %v515_v16 }
  0x15   :  { %v257_v38 = vshrl.u32 %v482_v37, %v515_v16  ;;  %vm260_vm3 = vcmp.lt.s32.totalorder %v513_v15, 2  ;;  %vm261_vm4 = vcmp.lt.s32.totalorder %v513_v15, 3  ;;  %vm262_vm5 = vcmp.lt.s32.totalorder %v513_v15, 4 }
  0x16   :  { %v526_v31 = vor.u32 %v245_v24, %v244_v22  ;;  %v531_v35 = vor.u32 %v248_v27, %v247_v25  ;;  %v533_v36 = vor.u32 %v251_v29, %v250_v28  ;;  %v255_v39 = vor.u32 %v254_v33, %v253_v19 }
  0x17   :  { %v258_v40 = vor.u32 %v257_v38, %v256_v34  ;;  %v89_v46 = vshll.u32 %v478_v21, %v508_v12  ;;  %v90_v47 = vshrl.u32 %v479_v23, %v511_v14  ;;  %v92_v62 = vshll.u32 %v479_v23, %v508_v12 }
  0x18   :  { %v267_v41 = vsel %vm259_vm2, %v526_v31, %v531_v35  ;;  %v271_v42 = vsel %vm259_vm2, %v531_v35, %v533_v36  ;;  %v268_v44 = vsel %vm262_vm5, %v255_v39, 920167782  ;;  %v93_v8 = vshrl.u32 %v480_v26, %v511_v14 }
  0x19   :  { %v269_v48 = vsel %vm261_vm4, %v533_v36, %v268_v44  ;;  %v272_v49 = vsel %vm262_vm5, %v258_v40, 1326507024  ;;  %v576_v61 = vor.u32 %v90_v47, %v89_v46  ;;  %v95_v22 = vshll.u32 %v480_v26, %v508_v12 }
  0x1a   :  { %v270_v51 = vsel %vm260_vm3, %v267_v41, %v269_v48  ;;  %v273_v52 = vsel %vm261_vm4, %v255_v39, %v272_v49  ;;  %v96_v24 = vshrl.u32 %v477_v18, %v511_v14  ;;  %v98_v25 = vshll.u32 %v477_v18, %v508_v12 }
  0x1b   :  { %v274_v56 = vsel %vm260_vm3, %v271_v42, %v273_v52  ;;  %v300_v57 = vand.u32 65535, %v270_v51  ;;  %v301_v58 = vshrl.u32 %v270_v51, 16  ;;  %v483_v28 = vmov 0  }
  0x1c   :  { %v278_v59 = vand.u32 65535, %v274_v56  ;;  %v279_v60 = vshrl.u32 %v274_v56, 16  ;;  %v99_v30 = vshrl.u32 %v481_v32, %v511_v14  ;;  %v243_v18 = vshrl.u32 %v478_v21, %v515_v16 }
  0x1d   :  { %v302_v63 = vmul.u32 %v300_v57, %v276_v50  ;;  %v303_v2 = vmul.u32 %v301_v58, %v276_v50  ;;  %v304_v3 = vmul.u32 %v300_v57, %v277_v53  ;;  %v305_v9 = vmul.u32 %v301_v58, %v277_v53 }
  0x1e   :  { %v280_v5 = vmul.u32 %v278_v59, %v276_v50  ;;  %v281_v6 = vmul.u32 %v279_v60, %v276_v50  ;;  %v282_v7 = vmul.u32 %v278_v59, %v277_v53  ;;  %v283_v13 = vmul.u32 %v279_v60, %v277_v53 }
  0x1f   :  { %v306_v10 = vshll.u32 %v303_v2, 16  ;;  %v308_v11 = vshll.u32 %v304_v3, 16  ;;  %v307_v34 = vshrl.u32 %v303_v2, 16  ;;  %v309_v42 = vshrl.u32 %v304_v3, 16 }
  0x20   :  { %v284_v19 = vshll.u32 %v281_v6, 16  ;;  %v286_v20 = vshll.u32 %v282_v7, 16  ;;  %v285_v38 = vshrl.u32 %v281_v6, 16  ;;  %v264_v46 = vsel %vm262_vm5, %v533_v36, 2102212464 }
  0x21   :  { %vm310_vm6 = vc.u32 %v302_v63, %v306_v10  ;;  %v312_v23 = vadd.s32 %v306_v10, %v302_v63  ;;  %v287_v47 = vshrl.u32 %v282_v7, 16  ;;  %v94_v49 = vor.u32 %v93_v8, %v92_v62 }
  0x22   :  { %vm288_vm7 = vc.u32 %v280_v5, %v284_v19  ;;  %v290_v27 = vadd.s32 %v284_v19, %v280_v5  ;;  %v311_v29 = vsel %vm310_vm6, 1, %v483_v28  ;;  %v263_v50 = vsel %vm259_vm2, %v243_v18, %v526_v31 }
  0x23   :  { %v289_v33 = vsel %vm288_vm7, 1, %v483_v28  ;;  %v313_v26 = vadd.s32 %v311_v29, %v305_v9  ;;  %vm314_vm8 = vc.u32 %v312_v23, %v308_v11  ;;  %v265_v51 = vsel %vm261_vm4, %v531_v35, %v264_v46 }
  0x24   :  { %v291_v39 = vadd.s32 %v289_v33, %v283_v13  ;;  %vm292_vm9 = vc.u32 %v290_v27, %v286_v20  ;;  %v315_v40 = vsel %vm314_vm8, 1, %v483_v28  ;;  %v603_v16 = vadd.s32 %v312_v23, %v308_v11 }
  0x25   :  { %v293_v41 = vsel %vm292_vm9, 1, %v483_v28  ;;  %v317_v44 = vadd.s32 %v315_v40, %v313_v26  ;;  %v266_v53 = vsel %vm260_vm3, %v263_v50, %v265_v51  ;;  %v100_v57 = vor.u32 %v99_v30, %v98_v25 }
  0x26   :  { %v295_v48 = vadd.s32 %v293_v41, %v291_v39  ;;  %v101_v36 = vshll.u32 %v481_v32, %v508_v12  ;;  %v97_v59 = vor.u32 %v96_v24, %v95_v22  ;;  %v102_v31 = vshrl.u32 %v482_v37, %v511_v14 }
  0x27   :  { %v318_v52 = vadd.s32 %v317_v44, %v307_v34  ;;  %vm104_vm10 = vcmp.lt.s32.totalorder %v572_v55, 1  ;;  %v320_v35 = vmul.u32 %v549_v43, %v266_v53  ;;  %vm106_vm11 = vcmp.lt.s32.totalorder %v572_v55, 3 }
  0x28   :  { %v296_v56 = vadd.s32 %v295_v48, %v285_v38  ;;  %vm107_vm12 = vcmp.lt.s32.totalorder %v572_v55, 4  ;;  %v103_v62 = vor.u32 %v102_v31, %v101_v36  ;;  %vm105_vm13 = vcmp.lt.s32.totalorder %v572_v55, 2 }
  0x29   :  { %v319_v58 = vadd.s32 %v318_v52, %v309_v42  ;;  %v112_v12 = vsel %vm104_vm10, %v576_v61, %v94_v49  ;;  %v113_v32 = vsel %vm107_vm12, %v100_v57, 920167782  ;;  %v116_v63 = vsel %vm104_vm10, %v94_v49, %v97_v59 }
  0x2a   :  { %v612_v60 = vadd.s32 %v296_v56, %v287_v47  ;;  %v114_v43 = vsel %vm106_vm11, %v97_v59, %v113_v32  ;;  %v117_v5 = vsel %vm107_vm12, %v103_v62, 1326507024  ;;  %v635_v6 = vshll.u32 %v80_v4, 8 }
  0x2b   :  { %v323_v15 = vadd.s32 1, %v319_v58  ;;  %v115_v3 = vsel %vm105_vm13, %v112_v12, %v114_v43  ;;  %v88_v7 = vshrl.u32 %v478_v21, %v511_v14  ;;  %v118_v8 = vsel %vm106_vm11, %v100_v57, %v117_v5 }
  0x2c   :  { %vm322_vm14 = vc.u32 %v612_v60, %v603_v16  ;;  %v145_v9 = vand.u32 65535, %v115_v3  ;;  %v146_v10 = vshrl.u32 %v115_v3, 16  ;;  %v119_v13 = vsel %vm105_vm13, %v116_v63, %v118_v8 }
  0x2d   :  { %v324_v37 = vsel %vm322_vm14, %v323_v15, %v319_v58  ;;  %v121_v19 = vand.u32 65535, %v635_v6  ;;  %v122_v20 = vshrl.u32 %v635_v6, 16  ;;  %v109_v54 = vsel %vm107_vm12, %v97_v59, 2102212464 }
  0x2e   :  { %v325_v2 = vadd.s32 %v324_v37, %v320_v35  ;;  %v123_v4 = vand.u32 65535, %v119_v13  ;;  %v124_v22 = vshrl.u32 %v119_v13, 16  ;;  %v108_v33 = vsel %vm104_vm10, %v88_v7, %v576_v61 }
  0x2f   :  { %v147_v14 = vmul.u32 %v145_v9, %v121_v19  ;;  %v148_v21 = vmul.u32 %v146_v10, %v121_v19  ;;  %v149_v24 = vmul.u32 %v145_v9, %v122_v20  ;;  %v150_v34 = vmul.u32 %v146_v10, %v122_v20 }
  0x30   :  { %v326_v11 = vadd.s32 536870912, %v325_v2  ;;  %v125_v25 = vmul.u32 %v123_v4, %v121_v19  ;;  %v126_v27 = vmul.u32 %v124_v22, %v121_v19  ;;  %v127_v29 = vmul.u32 %v123_v4, %v122_v20 }
  0x31   :  { %v151_v26 = vshll.u32 %v148_v21, 16  ;;  %v110_v38 = vsel %vm106_vm11, %v94_v49, %v109_v54  ;;  %v128_v39 = vmul.u32 %v124_v22, %v122_v20  ;;  %v152_v42 = vshrl.u32 %v148_v21, 16 }
  0x32   :  { %v647_v23 = vshrl.u32 %v326_v11, 30  ;;  %v129_v40 = vshll.u32 %v126_v27, 16  ;;  %v131_v18 = vshll.u32 %v127_v29, 16  ;;  %v153_v44 = vshll.u32 %v149_v24, 16 }
  0x33   :  { %vm155_vm15 = vc.u32 %v147_v14, %v151_v26  ;;  %v157_v48 = vadd.s32 %v151_v26, %v147_v14  ;;  %v130_v52 = vshrl.u32 %v126_v27, 16  ;;  %v132_v56 = vshrl.u32 %v127_v29, 16 }
  0x34   :  { %v328_v30 = vshll.u32 %v647_v23, 30  ;;  %vm133_vm0 = vc.u32 %v125_v25, %v129_v40  ;;  %v135_v46 = vadd.s32 %v129_v40, %v125_v25  ;;  %v156_v47 = vsel %vm155_vm15, 1, %v483_v28 }
  0x35   :  { %v134_v61 = vsel %vm133_vm0, 1, %v483_v28  ;;  %v158_v51 = vadd.s32 %v156_v47, %v150_v34  ;;  %vm159_vm3 = vc.u32 %v157_v48, %v153_v44  ;;  %v154_v31 = vshrl.u32 %v149_v24, 16 }
  0x36   :  { %v329_v41 = vsub.s32 %v325_v2, %v328_v30  ;;  %v136_v53 = vadd.s32 %v134_v61, %v128_v39  ;;  %vm137_vm2 = vc.u32 %v135_v46, %v131_v18  ;;  %v160_v36 = vsel %vm159_vm3, 1, %v483_v28 }
  0x37   :  { %v138_v57 = vsel %vm137_vm2, 1, %v483_v28  ;;  %v162_v35 = vadd.s32 %v160_v36, %v158_v51  ;;  %v161_v12 = vadd.s32 %v157_v48, %v153_v44  ;;  %v111_v37 = vsel %vm105_vm13, %v108_v33, %v110_v38 }
  0x38   :  { %vm330_vm1 = vcmp.lt.s32.totalorder %v329_v41, 0  ;;  %v331_v50 = vsub.s32 0, %v329_v41  ;;  %v140_v59 = vadd.s32 %v138_v57, %v136_v53  ;;  %v321_v2 = vadd.s32 %v603_v16, %v612_v60 }
  0x39   :  { %v163_v32 = vadd.s32 %v162_v35, %v152_v42  ;;  %v165_v7 = vmul.u32 %v635_v6, %v111_v37  ;;  %vm229_vm6 = vcmp.lt.s32.totalorder %v500_v1, 0  ;;  %vm667_vm7 = vcmp.le.f32.partialorder %v227_v17, 0.7853982 }
  0x3a   :  { %v332_v49 = vsel %vm330_vm1, %v331_v50, %v329_v41  ;;  %v141_v62 = vadd.s32 %v140_v59, %v130_v52  ;;  %v351_v52 = vsub.s32 4, %v647_v23  ;;  %v26_v59 = vld [vmem:[#allocation2 + $0x18] sm:$0xff]  ;;  %vm74_vm10 = vcmp.lt.s32.totalorder %v498_v0, 0 }
  0x3b   :  { %v333_v58 = vclz %v332_v49  ;;  %v164_v63 = vadd.s32 %v163_v32, %v154_v31  ;;  %v67_v37 = vmul.f32 0.19607843, %v26_v59  ;;  %vm685_vm11 = vcmp.le.f32.partialorder %v72_v45, 0.7853982 }
  0x3c   :  { %v142_v43 = vadd.s32 %v141_v62, %v132_v56  ;;  %v352_v31 = vsel %vm229_vm6, %v351_v52, %v647_v23  ;;  %vm370_vm15 = vweird.f32 %v500_v1 }
  0x3d   :  { %v409_v15 = vadd.s32 4294967294, %v333_v58  ;;  %v168_v9 = vadd.s32 1, %v164_v63  ;;  %v25_v58 = vld [vmem:[#allocation2 + $0x10] sm:$0xff]  ;;  %69 = vst [vmem:[#allocation5 + $0x8] sm:$0xff] %v67_v37 }
  0x3e   :  { %vm167_vm5 = vc.u32 %v142_v43, %v161_v12  ;;  %v166_v39 = vadd.s32 %v161_v12, %v142_v43  ;;  %v354_v43 = vsel %vm667_vm7, 0, %v352_v31 }
  0x3f   :  { %vm410_vm4 = vcmp.lt.s32.totalorder %v409_v15, 0  ;;  %v169_v13 = vsel %vm167_vm5, %v168_v9, %v164_v63 }
  0x40   :  { %v336_v3 = vsel %vm410_vm4, 0, %v409_v15  ;;  %v170_v20 = vadd.s32 %v169_v13, %v165_v7  ;;  %v66_v15 = vmul.f32 0.19607843, %v25_v58 }
  0x41   :  { %v337_v5 = vsub.s32 32, %v336_v3  ;;  %v341_v28 = vsub.s32 4294967266, %v336_v3  ;;  %v338_v8 = vshll.u32 %v329_v41, %v336_v3 }
  0x42   :  { %v171_v22 = vadd.s32 536870912, %v170_v20  ;;  %68 = vst [vmem:[#allocation5] sm:$0xff] %v66_v15 }
  0x43   :  { %v339_v10 = vshrl.u32 %v321_v2, %v337_v5  ;;  %v342_v11 = vadd.s32 127, %v341_v28  ;;  %v371_v28 = vadd.s32 3, %v354_v43 }
  0x44   :  { %v172_v21 = vshrl.u32 %v171_v22, 30 }
  0x45   :  { %v340_v19 = vor.u32 %v339_v10, %v338_v8  ;;  %v343_v55 = vshll.u32 %v342_v11, 23  ;;  %v31_v10 = vlaneseq  ;;  %v372_v45 = vand.u32 3, %v371_v28 }
  0x46   :  { %v173_v60 = vshll.u32 %v172_v21, 30  ;;  %v196_v5 = vsub.s32 4, %v172_v21 }
  0x47   :  { %v344_v54 = vor.u32 4788187, %v343_v55  ;;  %v347_v4 = vcvt.s32.f32 %v340_v19  ;;  %vm374_vm12 = vcmp.eq.s32.totalorder %v372_v45, 0  ;;  %vm377_vm13 = vcmp.eq.s32.totalorder %v372_v45, 2 }
  0x48   :  { %v174_v25 = vsub.s32 %v170_v20, %v173_v60  ;;  %v197_v19 = vsel %vm74_vm10, %v196_v5, %v172_v21  ;;  %vm373_vm14 = vcmp.lt.s32.totalorder %v372_v45, 2 }
  0x49   :  { %v345_v14 = vand.u32 2147483647, %v344_v54  ;;  %v199_v54 = vsel %vm685_vm11, 0, %v197_v19 }
  0x4a   :  { %vm175_vm8 = vcmp.lt.s32.totalorder %v174_v25, 0  ;;  %v176_v29 = vsub.s32 0, %v174_v25 }
  0x4b   :  { %v348_v16 = vmul.f32 %v347_v4, %v345_v14  ;;  %v32_v14 = vand.u32 127, %v31_v10 }
  0x4c   :  { %v177_v33 = vsel %vm175_vm8, %v176_v29, %v174_v25  ;;  %v216_v29 = vadd.s32 3, %v199_v54 }
  0x4d   :  { %v349_v24 = vxor.u32 2147483648, %v348_v16  ;;  %v178_v34 = vclz %v177_v33  ;;  %v43_v33 = vadd.s32 128, %v32_v14  ;;  %vm40_vm0 = vcmp.lt.s32.totalorder %v32_v14, 127 }
  0x4e   :  { %vm33_vm2 = vcmp.lt.s32.totalorder %v32_v14, 1  ;;  %vm44_vm3 = vcmp.eq.s32.totalorder %v32_v14, 0 }
  0x4f   :  { %v350_v27 = vsel %vm229_vm6, %v349_v24, %v348_v16  ;;  %v406_v38 = vadd.s32 4294967294, %v178_v34  ;;  %vm53_vm1 = vcmp.eq.s32.totalorder %v43_v33, 255 }
  0x50   :  { %v353_v30 = vsel %vm667_vm7, %v500_v1, %v350_v27  ;;  %vm215_vm7 = vweird.f32 %v498_v0 }
  0x51   :  { %v355_v26 = vmul.f32 %v353_v30, %v353_v30  ;;  %vm407_vm9 = vcmp.lt.s32.totalorder %v406_v38, 0 }
  0x52   :  { %v181_v40 = vsel %vm407_vm9, 0, %v406_v38 }
  0x53   :  { %v363_v17 = vmul.f32 -0.00019511016, %v355_v26  ;;  %v182_v18 = vsub.s32 32, %v181_v40  ;;  %v356_v41 = vmul.f32 -0.001358992, %v355_v26  ;;  %v183_v44 = vshll.u32 %v174_v25, %v181_v40 }
  0x54   :  { %v186_v47 = vsub.s32 4294967266, %v181_v40 }
  0x55   :  { %v364_v42 = vadd.f32 0.008332121, %v363_v17  ;;  %v184_v46 = vshrl.u32 %v166_v39, %v182_v18  ;;  %v357_v48 = vadd.f32 0.041655596, %v356_v41  ;;  %v217_v39 = vand.u32 3, %v216_v29 }
  0x56   :  { %v187_v51 = vadd.s32 127, %v186_v47 }
  0x57   :  { %v365_v50 = vmul.f32 %v364_v42, %v355_v26  ;;  %v185_v61 = vor.u32 %v184_v46, %v183_v44  ;;  %v358_v49 = vmul.f32 %v357_v48, %v355_v26  ;;  %v61_v42 = vmul.f32 2.0, %v500_v1 }
  0x58   :  { %v188_v53 = vshll.u32 %v187_v51, 23  ;;  %v60_v44 = vmul.f32 2.0, %v498_v0  ;;  %vm218_vm4 = vcmp.lt.s32.totalorder %v217_v39, 2  ;;  %vm222_vm5 = vcmp.eq.s32.totalorder %v217_v39, 2 }
  0x59   :  { %v366_v56 = vadd.f32 -0.16666654, %v365_v50  ;;  %v192_v36 = vcvt.s32.f32 %v185_v61  ;;  %v359_v62 = vadd.f32 -0.4999988, %v358_v49  ;;  %vm219_vm6 = vcmp.eq.s32.totalorder %v217_v39, 0 }
  0x5a   :  { %v189_v57 = vor.u32 4788187, %v188_v53 }
  0x5b   :  { %v367_v12 = vmul.f32 %v366_v56, %v355_v26  ;;  %v360_v23 = vmul.f32 %v359_v62, %v355_v26 }
  0x5c   :  { %v190_v35 = vand.u32 2147483647, %v189_v57 }
  0x5d   :  { %v368_v3 = vadd.f32 1.0, %v367_v12  ;;  %v361_v11 = vadd.f32 1.0, %v360_v23 }
  0x5e   :  { %v193_v32 = vmul.f32 %v192_v36, %v190_v35 }
  0x5f   :  { %v369_v13 = vmul.f32 %v368_v3, %v353_v30  ;;  %v378_v60 = vxor.u32 2147483648, %v361_v11 }
  0x60   :  { %v194_v2 = vxor.u32 2147483648, %v193_v32 }
  0x61   :  { %v375_v16 = vxor.u32 2147483648, %v369_v13  ;;  %v379_v26 = vsel %vm377_vm13, %v378_v60, %v369_v13 }
  0x62   :  { %v195_v7 = vsel %vm74_vm10, %v194_v2, %v193_v32 }
  0x63   :  { %v198_v8 = vsel %vm685_vm11, %v498_v0, %v195_v7  ;;  %v376_v34 = vsel %vm374_vm12, %v361_v11, %v375_v16 }
  0x64   :  { %v200_v9 = vmul.f32 %v198_v8, %v198_v8  ;;  %v380_v40 = vsel %vm373_vm14, %v376_v34, %v379_v26 }
  0x65   :  { %v381_v50 = vsel %vm370_vm15, nan, %v380_v40 }
  0x66   :  { %v201_v55 = vmul.f32 -0.001358992, %v200_v9  ;;  %v208_v20 = vmul.f32 -0.00019511016, %v200_v9  ;;  %v383_v31 = vmul.f32 0.19607843, %v381_v50 }
  0x68   :  { %v202_v4 = vadd.f32 0.041655596, %v201_v55  ;;  %v209_v22 = vadd.f32 0.008332121, %v208_v20 }
  0x6a   :  { %v203_v6 = vmul.f32 %v202_v4, %v200_v9  ;;  %v210_v24 = vmul.f32 %v209_v22, %v200_v9 }
  0x6c   :  { %v204_v30 = vadd.f32 -0.4999988, %v203_v6  ;;  %v211_v21 = vadd.f32 -0.16666654, %v210_v24 }
  0x6e   :  { %v205_v38 = vmul.f32 %v204_v30, %v200_v9  ;;  %v212_v17 = vmul.f32 %v211_v21, %v200_v9 }
  0x70   :  { %v206_v18 = vadd.f32 1.0, %v205_v38  ;;  %v213_v41 = vadd.f32 1.0, %v212_v17 }
  0x72   :  { %v214_v46 = vmul.f32 %v213_v41, %v198_v8  ;;  %v223_v47 = vxor.u32 2147483648, %v206_v18 }
  0x74   :  { %v220_v1 = vxor.u32 2147483648, %v214_v46  ;;  %v224_v58 = vsel %vm222_vm5, %v223_v47, %v214_v46 }
  0x76   :  { %v221_v15 = vsel %vm219_vm6, %v206_v18, %v220_v1 }
  0x77   :  { %v225_v12 = vsel %vm218_vm4, %v221_v15, %v224_v58 }
  0x78   :  { %v37_v25 = vpop.permute.xlu1 %36  ;;  %v28_v27 = vpop.permute.xlu0 %27  ;;  %v226_v37 = vsel %vm215_vm7, nan, %v225_v12 }
  0x79   :  { %v382_v63 = vmul.f32 0.19607843, %v226_v37 }
  0x80   :  { %v39_v48 = vpop.permute.xlu1 %38  ;;  %v30_v61 = vpop.permute.xlu0 %29 }
  0x81   :  { %v42_v51 = vsel %vm40_vm0, %v39_v48, %v37_v25  ;;  %v34_v52 = vsel %vm33_vm2, %v28_v27, %v30_v61  ;;  %v35_v53 = vsel %vm33_vm2, %v30_v61, %v28_v27  ;;  %v41_v59 = vsel %vm40_vm0, %v37_v25, %v39_v48 }
  0x82   :  { %v59_v49 = vsel %vm53_vm1, 0.0, %v42_v51  ;;  %v50_v56 = vsel %vm44_vm3, 0.0, %v35_v53  ;;  %v63_v57 = vsub.f32 %v61_v42, %v34_v52 }
  0x83   :  { %v62_v36 = vsub.f32 %v60_v44, %v50_v56 }
  0x84   :  { %v65_v35 = vsub.f32 %v63_v57, %v59_v49 }
  0x85   :  { %v64_v62 = vsub.f32 %v62_v36, %v41_v59 }
  0x86   :  { %v71_v32 = vmul.f32 -5.1, %v65_v35 }
  0x87   :  { %v70_v43 = vmul.f32 -5.1, %v64_v62 }
  0x88   :  { %v385_v0 = vsub.f32 %v71_v32, %v383_v31 }
  0x89   :  { %v384_v2 = vsub.f32 %v70_v43, %v382_v63 }
  0x8a   :  { %387 = vst [vmem:[#allocation5 + $0x18] sm:$0xff] %v385_v0 }
  0x8b   :  { %386 = vst [vmem:[#allocation5 + $0x10] sm:$0xff] %v384_v2 }
  0x8c   :  { %398 = dma.vmem_to_hbm [thread:$0]  %s394_s13, 512, %s396_s16, [#allocation4]  }
  0x8d   :  { %472 = dma.done.wait [#allocation4], 512  }
  0x8e   :  { %473 = vsyncadd [#allocation4], 4294966784 }
  0x8f   :  { %403 = vsyncpa [#allocation3], 1 }
  0x90   :  { %404 = vsyncpa [#allocation4], 1 }

</bundles_post_ra>
